<compile_context>
chip_gen: v7x
topology: tpu7x:2x2x1
jax: 0.10.0
libtpu: 0.0.40
codegen_flags: <defaults>
</compile_context>

<pallas_src>
import functools

import jax
import jax.numpy as jnp
from jax.experimental import pallas as pl
from jax.experimental.pallas import tpu as pltpu


# -----------------------------------------------------------------------------
# VMEM budget / tile selection helpers
# -----------------------------------------------------------------------------
def _vmem_budget_bytes():
    # Leave headroom below physical VMEM (v5e/v6e: 128 MiB -> ~96 MiB,
    # v7x: 64 MiB -> ~48 MiB). Fall back to the v7x-safe value.
    try:
        cap = pltpu.get_tpu_info().vmem_capacity_bytes
        return int(cap * 3 // 4)
    except Exception:
        return 48 * 1024 * 1024


def _tile_candidates(n, preferred):
    """Full-N first, then preferred tile sizes (descending) that divide N."""
    return [n] + [t for t in preferred if t < n and n % t == 0]


def _pick_transform_tiles(n, d_in, d_out, nb, budget):
    """Row tile and basis-chunk for the fused h @ basis matmul (kernel 1)."""
    m_cands = _tile_candidates(n, (1024, 512, 256, 128, 64, 32))
    if d_out % 128 == 0:
        b_cands = sorted({d for d in range(1, nb + 1) if nb % d == 0},
                         reverse=True)
    else:
        b_cands = [nb]   # chunked last-dim blocks would not be lane-aligned

    def cost(tm, bc):    # double-buffered bf16 blocks
        return 2 * (tm * d_in + d_in * bc * d_out + tm * bc * d_out) * 2

    for bc in b_cands:                        # prefer reading h only once
        for prefer_split in (True, False):    # prefer >=2 row tiles (megacore)
            for tm in m_cands:
                if prefer_split and n // tm < 2:
                    continue
                if cost(tm, bc) <= budget:
                    return tm, bc
    return m_cands[-1], b_cands[-1]


def _pick_agg_tiles(n, d_in, d_out, out_bytes, use_self_loop, budget):
    """Row (dst) tile and K (src) tile for the aggregation kernel (kernel 2).

    Row tile: sublane dim of adjacency/output blocks -> multiple of 32 (bf16
    packing) or full N. K tile: lane dim of the adjacency block and sublane dim
    of the HB block -> multiple of 128 or full N. VMEM is now bounded
    independent of the graph size (the previous full-N HB slab is gone)."""
    n_cands = _tile_candidates(n, (512, 256, 128, 64, 32))
    k_cands = _tile_candidates(n, (4096, 2048, 1024, 512, 256, 128))

    def cost(tn, tk):
        vm = 2 * tn * tk * 2            # adjacency bf16, double buffered
        vm += 2 * tk * d_out * 2        # HB bf16, double buffered
        if use_self_loop:
            vm += 2 * (tn * d_in + d_in * d_out) * 2
        vm += 2 * d_out * 4             # bias
        vm += tn * d_out * out_bytes    # output block (written once at finalize)
        vm += tn * d_out * 4            # f32 accumulator scratch
        return vm

    for prefer_split in (True, False):  # >=2 row tiles keeps both v7x TCs busy
        for tn in n_cands:
            if prefer_split and n // tn < 2:
                continue
            for tk in k_cands:
                if cost(tn, tk) <= budget:
                    return tn, tk
    return n_cands[-1], k_cands[-1]


# -----------------------------------------------------------------------------
# Pallas kernel 1: fused per-basis feature transform
#   HB[:, b*D_out:(b+1)*D_out] = h @ basis[b]   as ONE wide matmul
# -----------------------------------------------------------------------------
def _basis_transform_kernel(h_ref, w_ref, hb_ref):
    hb_ref[...] = jnp.dot(h_ref[...], w_ref[...],
                          preferred_element_type=jnp.float32).astype(hb_ref.dtype)


def basis_transform(h, basis, budget):
    """h: (N, D_in), basis: (B, D_in, D_out) -> (N, B*D_out) bf16."""
    nb, d_in, d_out = basis.shape
    n = h.shape[0]
    tm, bc = _pick_transform_tiles(n, d_in, d_out, nb, budget)

    # W[i, b*D_out + o] = basis[b, i, o]  (small tensor; cheap transpose)
    w = jnp.transpose(basis, (1, 0, 2)).reshape(d_in, nb * d_out)

    return pl.pallas_call(
        _basis_transform_kernel,
        out_shape=jax.ShapeDtypeStruct((n, nb * d_out), jnp.bfloat16),
        grid_spec=pltpu.PrefetchScalarGridSpec(
            num_scalar_prefetch=0,
            grid=(n // tm, nb // bc),
            in_specs=[
                pl.BlockSpec((tm, d_in), lambda i, j: (i, 0)),
                pl.BlockSpec((d_in, bc * d_out), lambda i, j: (0, j)),
            ],
            out_specs=pl.BlockSpec((tm, bc * d_out), lambda i, j: (i, j)),
        ),
        compiler_params=pltpu.CompilerParams(
            dimension_semantics=("parallel", "parallel"),
            vmem_limit_bytes=budget),
    )(h.astype(jnp.bfloat16), w.astype(jnp.bfloat16))


# -----------------------------------------------------------------------------
# Pallas kernel 2: aggregation, tiled over destination rows, bases, and source
# nodes (K).  out[i] = ReLU( sum_b sum_k M_b[i, k] @ HB_b[k] + h[i]@W_self + bias )
# Grid = (row_tiles [parallel], bases [arbitrary], k_tiles [arbitrary]).
# -----------------------------------------------------------------------------
def _rgcn_agg_kernel(*refs, apply_relu, use_self_loop, hb_is_3d):
    if use_self_loop:
        adj_ref, hb_ref, h_ref, wself_ref, bias_ref, out_ref, acc_ref = refs
    else:
        adj_ref, hb_ref, bias_ref, out_ref, acc_ref = refs
        h_ref = wself_ref = None

    b = pl.program_id(1)
    k = pl.program_id(2)

    @pl.when(jnp.logical_and(b == 0, k == 0))
    def _init():
        acc_ref[...] = jnp.zeros_like(acc_ref)

    hb = hb_ref[0] if hb_is_3d else hb_ref[...]
    # (tile_n, tile_k) @ (tile_k, D_out); bf16 operands, f32 MXU accumulate.
    acc_ref[...] += jnp.dot(adj_ref[0], hb, preferred_element_type=jnp.float32)

    @pl.when(jnp.logical_and(b == pl.num_programs(1) - 1,
                             k == pl.num_programs(2) - 1))
    def _finalize():
        res = acc_ref[...]
        if use_self_loop:  # statically gated: no wasted matmul when False
            res = res + jnp.dot(h_ref[...], wself_ref[...],
                                preferred_element_type=jnp.float32)
        res = res + bias_ref[...]
        if apply_relu:
            res = jnp.maximum(res, 0.0)
        out_ref[...] = res.astype(out_ref.dtype)


def rgcn_layer(adj_basis, h, basis, w_self, bias, *, apply_relu=True,
               use_self_loop=False, out_dtype=jnp.float32):
    """adj_basis: (B, N, N) per-basis weighted adjacency (bf16), h: (N, D_in),
    basis: (B, D_in, D_out), w_self: (D_in, D_out) or None, bias: (1, D_out).
    Returns (N, D_out) in `out_dtype`."""
    nb, n, _ = adj_basis.shape
    d_in = h.shape[1]
    d_out = basis.shape[2]
    budget = _vmem_budget_bytes()
    out_bytes = jnp.dtype(out_dtype).itemsize
    tile_n, tile_k = _pick_agg_tiles(n, d_in, d_out, out_bytes, use_self_loop,
                                     budget)

    hb = basis_transform(h, basis, budget)                # (N, B*D_out) bf16
    hb_is_3d = (nb > 1) and (d_out % 128 != 0)
    if hb_is_3d:
        # D_out-wide blocks of the flat layout would not be lane-aligned; fall
        # back to a (B, N, D_out) layout (extra transpose over the small HB).
        hb = jnp.transpose(hb.reshape(n, nb, d_out), (1, 0, 2))

    if adj_basis.dtype != jnp.bfloat16:
        adj_basis = adj_basis.astype(jnp.bfloat16)        # normally a no-op
    h_bf = h.astype(jnp.bfloat16)                         # no-op for hidden layers
    bias_f32 = bias.astype(jnp.float32)

    if hb_is_3d:
        hb_spec = pl.BlockSpec((1, tile_k, d_out), lambda i, b, k: (b, k, 0))
    else:
        hb_spec = pl.BlockSpec((tile_k, d_out), lambda i, b, k: (k, b))

    in_specs = [
        # TODO(synk): sweep pipeline_mode=pl.Buffered(3) on this stream once
        # per-step blocks shrink enough to expose DMA issue latency.
        pl.BlockSpec((1, tile_n, tile_k), lambda i, b, k: (b, i, k)),
        hb_spec,
    ]
    args = [adj_basis, hb]
    if use_self_loop:
        in_specs += [
            pl.BlockSpec((tile_n, d_in), lambda i, b, k: (i, 0)),
            pl.BlockSpec((d_in, d_out), lambda i, b, k: (0, 0)),
        ]
        args += [h_bf, w_self.astype(jnp.bfloat16)]
    in_specs += [pl.BlockSpec((1, d_out), lambda i, b, k: (0, 0))]
    args += [bias_f32]

    kernel = functools.partial(_rgcn_agg_kernel,
                               apply_relu=apply_relu,
                               use_self_loop=use_self_loop,
                               hb_is_3d=hb_is_3d)

    return pl.pallas_call(
        kernel,
        out_shape=jax.ShapeDtypeStruct((n, d_out), out_dtype),
        grid_spec=pltpu.PrefetchScalarGridSpec(
            num_scalar_prefetch=0,
            grid=(n // tile_n, nb, n // tile_k),    # reduction axes last
            in_specs=in_specs,
            out_specs=pl.BlockSpec((tile_n, d_out), lambda i, b, k: (i, 0)),
            scratch_shapes=[pltpu.VMEM((tile_n, d_out), jnp.float32)]),
        compiler_params=pltpu.CompilerParams(
            dimension_semantics=("parallel", "arbitrary", "arbitrary"),
            vmem_limit_bytes=budget),
    )(*args)


# -----------------------------------------------------------------------------
# BaseRGCN equivalent (parameter setup + sparse->dense scatter = JAX glue)
# -----------------------------------------------------------------------------
class BaseRGCNPallas:
    def __init__(self, num_nodes, h_dim, out_dim, num_rels, num_bases,
                 num_hidden_layers=1, dropout=0.0, use_self_loop=False,
                 key=None):
        self.num_nodes = num_nodes
        self.h_dim = h_dim
        self.out_dim = out_dim          # TODO(synk): out_dim unused — base class only builds h_dim->h_dim hidden layers (input/output layers are None).
        self.num_rels = num_rels
        self.num_bases = None if num_bases < 0 else num_bases
        self.num_hidden_layers = num_hidden_layers
        self.dropout = dropout          # TODO(synk): dropout is identity here (eval mode).
        self.use_self_loop = use_self_loop

        key = jax.random.PRNGKey(0) if key is None else key
        nb = self.num_bases if self.num_bases is not None else num_rels

        self.layers = []
        for _ in range(num_hidden_layers):
            key, k1, k2, k3 = jax.random.split(key, 4)
            basis = jax.random.normal(k1, (nb, h_dim, h_dim), jnp.float32) * 0.1
            if self.num_bases is not None:
                comp = jax.random.normal(k2, (num_rels, nb), jnp.float32) * 0.1
            else:
                comp = jnp.eye(num_rels, dtype=jnp.float32)   # one "basis" per rel
            if use_self_loop:
                w_self = jax.random.normal(k3, (h_dim, h_dim), jnp.float32) * 0.1
            else:
                w_self = None
            bias = jnp.zeros((1, h_dim), jnp.float32)
            self.layers.append((basis, comp, w_self, bias))

    def _build_basis_adj(self, g, rel, norm, comp):
        """Per-BASIS weighted adjacency: M[b, v, u] = sum over edges u->v with
        relation r of norm_e * comp[r, b]. Built directly in bf16 so the kernel
        consumes it without an extra cast pass over the largest tensor."""
        src, dst = g
        norm = jnp.reshape(norm, (-1,)).astype(jnp.float32)
        edge_w = (comp[rel].astype(jnp.float32) * norm[:, None]).astype(jnp.bfloat16)
        nb = comp.shape[1]
        adj = jnp.zeros((nb, self.num_nodes, self.num_nodes), jnp.bfloat16)
        adj = adj.at[:, dst, src].add(edge_w.T)                     # (B, N, N)
        return adj

    def forward(self, g, h, rel, norm):
        n_layers = len(self.layers)
        for li, (basis, comp, w_self, bias) in enumerate(self.layers):
            adj_b = self._build_basis_adj(g, rel, norm, comp)
            last = (li == n_layers - 1)
            # bf16 hidden-layer outputs halve writeback and feed the next
            # layer's bf16 kernels directly; keep f32 only on the final layer.
            h = rgcn_layer(adj_b, h, basis, w_self, bias,
                           apply_relu=True,
                           use_self_loop=self.use_self_loop,
                           out_dtype=jnp.float32 if last else jnp.bfloat16)
        return h


# -----------------------------------------------------------------------------
# Example / smoke test
# -----------------------------------------------------------------------------
if __name__ == "__main__":
    # h_dim is a multiple of 128 so every store is lane-dense and the fused
    # flat HB layout is used; still a small graph.
    num_nodes = 64
    h_dim = 128
    num_rels = 4
    num_bases = 2
    num_edges = 192

    key = jax.random.PRNGKey(0)
    k_h, k_src, k_dst, k_rel, k_params = jax.random.split(key, 5)

    h = jax.random.normal(k_h, (num_nodes, h_dim), jnp.float32)
    src = jax.random.randint(k_src, (num_edges,), 0, num_nodes)
    dst = jax.random.randint(k_dst, (num_edges,), 0, num_nodes)
    rel = jax.random.randint(k_rel, (num_edges,), 0, num_rels)

    # standard RGCN edge norm: 1 / in-degree of destination node
    in_deg = jnp.zeros((num_nodes,), jnp.float32).at[dst].add(1.0)
    norm = (1.0 / jnp.maximum(in_deg[dst], 1.0)).reshape(-1, 1)

    model = BaseRGCNPallas(num_nodes=num_nodes, h_dim=h_dim, out_dim=h_dim,
                           num_rels=num_rels, num_bases=num_bases,
                           num_hidden_layers=2, dropout=0.0,
                           use_self_loop=True, key=k_params)

    out = model.forward((src, dst), h, rel, norm)
    out = jax.block_until_ready(out)

    # pure-JAX f32 reference in the original per-relation formulation
    adj_r = jnp.zeros((num_rels, num_nodes, num_nodes), jnp.float32)
    adj_r = adj_r.at[rel, dst, src].add(jnp.reshape(norm, (-1,)))
    ref = h
    for (basis, comp, w_self, bias) in model.layers:
        w_rel = jnp.einsum('rb,bio->rio', comp, basis)
        msg = jnp.einsum('rvu,ud,rdo->vo', adj_r, ref, w_rel)
        if model.use_self_loop:
            msg = msg + ref @ w_self
        ref = jnp.maximum(msg + bias, 0.0)

    assert out.dtype == jnp.float32
    assert jnp.allclose(out, ref, atol=5e-2, rtol=5e-2), "mismatch vs reference"
    print("KERNEL_OK")
</pallas_src>

<mosaic_0001>
module attributes {stable_mosaic.version = 11 : i64} {
  func.func @_basis_transform_kernel(%arg0: i32, %arg1: i32, %arg2: memref<32x128xbf16, #tpu.memory_space<vmem>>, %arg3: memref<128x256xbf16, #tpu.memory_space<vmem>>, %arg4: memref<32x256xbf16, #tpu.memory_space<vmem>>) attributes {dimension_semantics = [#tpu.dimension_semantics<parallel>, #tpu.dimension_semantics<parallel>], iteration_bounds = array<i64: 2, 1>, scalar_prefetch = 0 : i64, scratch_operands = 0 : i64, tpu.core_type = #tpu.core_type<tc>, window_params = [{transform_indices = @transform_0, window_bounds = array<i64: 32, 128>}, {transform_indices = @transform_1, window_bounds = array<i64: 128, 256>}, {transform_indices = @transform_2, window_bounds = array<i64: 32, 256>}]} {
    %c0 = arith.constant 0 : index
    %c0_0 = arith.constant 0 : index
    %0 = vector.load %arg2[%c0, %c0_0] : memref<32x128xbf16, #tpu.memory_space<vmem>>, vector<32x128xbf16>
    %c0_1 = arith.constant 0 : index
    %c0_2 = arith.constant 0 : index
    %1 = vector.load %arg3[%c0_1, %c0_2] : memref<128x256xbf16, #tpu.memory_space<vmem>>, vector<128x256xbf16>
    %cst = arith.constant dense<0.000000e+00> : vector<32x256xf32>
    %2 = tpu.matmul %0, %1, %cst {dimension_numbers = #tpu.dot_dimension_numbers<[1], [0], [0], [1], [0, 0, 1, 1], [], []>} : vector<32x128xbf16>, vector<128x256xbf16>, vector<32x256xf32> -> vector<32x256xf32>
    %3 = arith.truncf %2 : vector<32x256xf32> to vector<32x256xbf16>
    %c0_3 = arith.constant 0 : index
    %c0_4 = arith.constant 0 : index
    %4 = vector.load %arg4[%c0_3, %c0_4] : memref<32x256xbf16, #tpu.memory_space<vmem>>, vector<32x256xbf16>
    tpu.vector_store %arg4[%c0_3, %c0_4], %3 {strides = array<i32>} : memref<32x256xbf16, #tpu.memory_space<vmem>>, vector<32x256xbf16>,
    return
  }
  func.func @transform_0(%arg0: i32, %arg1: i32) -> (i32, i32) {
    %c0_i32 = arith.constant 0 : i32
    %c0_i32_0 = arith.constant 0 : i32
    return %arg0, %c0_i32 : i32, i32
  }
  func.func @transform_1(%arg0: i32, %arg1: i32) -> (i32, i32) {
    %c0_i32 = arith.constant 0 : i32
    %c0_i32_0 = arith.constant 0 : i32
    return %c0_i32, %arg1 : i32, i32
  }
  func.func @transform_2(%arg0: i32, %arg1: i32) -> (i32, i32) {
    %c0_i32 = arith.constant 0 : i32
    return %arg0, %arg1 : i32, i32
  }
}

</mosaic_0001>

<bundles_post_ra>
// kernel: tpu_custom_call.1
= control target key start
LH: loop header
LB: loop body
LE: loop exit
PB: predicated region body
PF: predicated region fallthrough
CT: control target
= control target key end

     0   :  { %7 = vsyncpa [#allocation3], 0  ;;  %s1074_s0 = inlined_call_operand.hbm [shape: bf16[64,128], index: 0, kind: input, shape index: {}]   ;;  %s1075_s1 = inlined_call_operand.hbm [shape: bf16[128,256], index: 1, kind: input, shape index: {}]   ;;  %s1076_s2 = inlined_call_operand.hbm [shape: bf16[64,256], index: 2, kind: output, shape index: {}]  }
   0x1   :  { %9 = vsyncpa [#allocation3 + $0x1], 0 }
   0x2   :  { %10 = vsyncpa [#allocation6], 0 }
   0x3   :  { %11 = vsyncpa [#allocation4], 0 }
   0x4   :  { %13 = vsyncpa [#allocation4 + $0x1], 0  ;;  %s850_s9 = smov 0   ;;  %s852_s10 = smov 0  }
   0x5   :  { %s854_s11 = smov 0   ;;  %s856_s12 = smov 0  }
   0x6   :  { %s858_s13 = smov 0   ;;  %s860_s14 = smov 0  }
   0x7 LB: > { %s510_s15 = sadd.s32 4294967295, %s823_s14   ;;  %s511_s16 = sadd.s32 4294967294, %s823_s14   ;;  %s823_s14 = sphi %s860_s14, %s19_s14   ;;  %s819_s13 = sphi %s858_s13, %s1100_s13   ;;  %s815_s12 = sphi %s856_s12, %s1099_s12   ;;  %s811_s11 = sphi %s854_s11, %s1098_s11   ;;  %s807_s10 = sphi %s852_s10, %s1097_s10   ;;  %s803_s9 = sphi %s850_s9, %s1096_s9  }
   0x8   : > { %p51_p0 = scmp.ne.s32.totalorder %s807_s10, %s803_s9  ;;  %p884_p1 = scmp.eq.s32.totalorder %s510_s15, 0 }
   0x9   : > { %p888_p2 = scmp.eq.s32.totalorder %s510_s15, 1  ;;  %p109_p3 = scmp.eq.s32.totalorder %s511_s16, 1 }
   0xa   : > { %s1081_s17 = scalar_select %p884_p1, 1, 0 }
   0xb   : > { %s1082_s18 = scalar_select %p888_p2, 1, 0 }
   0xc   : > { %p894_p4 = por %p884_p1, %p51_p0  ;;  %p512_p5 = scmp.ge.s32.totalorder %s823_s14, 1 }
   0xd   : > { %p899_p6 = por %p109_p3, %p51_p0  ;;  %p116_p7 = scmp.lt.s32.totalorder %s823_s14, 3 }
   0xe   : > { %s1083_s19 = scalar_select %p894_p4, 1, 0 }
   0xf   : > { %s1084_s20 = scalar_select %p899_p6, 1, 0 }
  0x10   : > { %p904_p8 = pnand %p512_p5, %p116_p7  ;;  %s825_s22 = smov [#allocation5]  }
  0x11   : > { %s131_s23 = sshll.u32 %s825_s22, 4  ;;  %s31_s25 = sadd.s32 1, %s819_s13  ;;  %s132_s23 = int_to_ptr.vmem [resolvable:$true] %s131_s23 }
  0x12   : > { %s1085_s21 = scalar_select %p904_p8, 1, 0 }
  0x13   : > { %p581_p9 = pneg %p904_p8  ;;  %s679_s28 = scalar_lea.hbm %s1075_s1, 2048 }
  0x14   : > { %p680_p12 = scmp.ne.s32.totalorder %s1075_s1, %s679_s28  ;;  %p686_p5 = scmp.lt.u32.totalorder %s679_s28, %s1075_s1 }
  0x15   : > { %p913_p11 = pnand %p581_p9, %p884_p1 }
  0x17   : > { %p681_p13 = pneg %p913_p11 }
  0x19   : > { %p682_p0 = pnand %p681_p13, %p680_p12 }
  0x1b   : > { %p683_p3 = pneg %p682_p0 }
  0x1d   : > { %p688_p7 = pnand %p686_p5, %p683_p3 }
  0x1f   : > { %691 = shalt.err (!%p688_p7)
}
  0x20   : > { %s692_s5 = scalar_lea.vmem %s132_s23, 2048  ;;  %p700_p1 = scmp.lt.s32.totalorder %s132_s23, %s132_s23 }
  0x21   : > { %p693_p9 = scmp.ne.s32.totalorder %s132_s23, %s692_s5  ;;  %p701_p4 = scmp.lt.s32.totalorder %s692_s5, %s692_s5 }
  0x23   : > { %p695_p10 = pnand %p693_p9, %p681_p13  ;;  %p702_p8 = por %p701_p4, %p700_p1 }
  0x25   : > { %p696_p6 = pneg %p695_p10 }
  0x27   : > { %p703_p2 = pnand %p702_p8, %p696_p6 }
  0x29   : > { %706 = shalt.err (!%p703_p2)
}
  0x2a   : > { %s826_s6 = smov 128   ;;  %s827_s7 = smov 8  }
  0x2b   : > { %584 = dma.hbm_to_vmem [thread:$0]  (!%p913_p11), %s1075_s1, 2048, %s132_s23, [#allocation6], %s826_s6, %s826_s6, %s827_s7  }
  0x2c   : > { %p33_p1 = scmp.ge.s32.totalorder %s31_s25, 2  ;;  %s38_s16 = sadd.s32 1, %s811_s11 }
  0x2d   : > { %p45_p2 = scmp.ne.s32.totalorder %s811_s11, %s807_s10  ;;  %p46_p4 = scmp.eq.s32.totalorder %s823_s14, 0 }
  0x2e   : > { %s1102_s25 = smov (%p33_p1, %s31_s25), 0  ;;  %p1088_p8 = scmp.ne.s32.totalorder %s1082_s18, 0 }
  0x2f   : > { %p940_p6 = por %p46_p4, %p45_p2  ;;  %s35_s24 = ssub.s32 %s819_s13, %s1102_s25 }
  0x30   : > { %p946_p10 = por %p1088_p8, %p45_p2  ;;  %p594_p12 = scmp.lt.s32.totalorder %s823_s14, 2 }
  0x31   : > { %p36_p11 = scmp.eq.s32.totalorder %s35_s24, 0  ;;  %s145_s23 = sand.u32 1, %s811_s11  }
  0x32   : > { %s515_s27 = sshll.u32 %s145_s23, 4  ;;  %s550_s29 = sshll.u32 %s819_s13, 8 }
  0x33   : > { %s955_s28 = scalar_select %p36_p11, %s811_s11, %s38_s16  }
  0x34   : > { %s961_s4 = scalar_lea.hbm %s1074_s0, %s550_s29  ;;  %s149_s18 = scalar_lea.vmem [#allocation2], %s515_s27 }
  0x35   : > { %s156_s5 = sshll.u32 %s149_s18, 4  ;;  %p967_p13 = pnand %p594_p12, %p940_p6  ;;  %s963_s5 = int_to_ptr.vmem [resolvable:$true] %s156_s5 }
  0x36   : > { %s971_s7 = scalar_lea.sflag [#allocation3], %s145_s23  ;;  %s707_s8 = scalar_lea.hbm %s961_s4, 256 }
  0x37   : > { %p708_p0 = scmp.ne.s32.totalorder %s961_s4, %s707_s8  ;;  %p709_p3 = pneg %p967_p13 }
  0x38   : > { %s712_s22 = scalar_lea.hbm %s1074_s0, 512  ;;  %p713_p9 = scmp.lt.u32.totalorder %s961_s4, %s1074_s0 }
  0x39   : > { %p710_p5 = pnand %p709_p3, %p708_p0  ;;  %p714_p1 = scmp.lt.u32.totalorder %s712_s22, %s707_s8 }
  0x3a   : > { %p716_p4 = scmp.lt.u32.totalorder %s707_s8, %s961_s4 }
  0x3b   : > { %p711_p7 = pneg %p710_p5  ;;  %p715_p2 = por %p714_p1, %p713_p9 }
  0x3d   : > { %p717_p6 = por %p716_p4, %p715_p2 }
  0x3f   : > { %p718_p8 = pnand %p717_p6, %p711_p7 }
  0x41   : > { %721 = shalt.err (!%p718_p8)
}
  0x42   : > { %s722_s23 = scalar_lea.vmem %s963_s5, 256  ;;  %s828_s29 = smov [#allocation2]  }
  0x43   : > { %p723_p12 = scmp.ne.s32.totalorder %s963_s5, %s722_s23  ;;  %s727_s30 = sshll.u32 %s828_s29, 4  ;;  %s728_s30 = int_to_ptr.vmem [resolvable:$false] %s727_s30 }
  0x44   : > { %s729_s3 = scalar_lea.vmem %s728_s30, 512  ;;  %p730_p5 = scmp.lt.s32.totalorder %s963_s5, %s728_s30 }
  0x45   : > { %p725_p11 = pnand %p723_p12, %p709_p3  ;;  %p731_p9 = scmp.lt.s32.totalorder %s729_s3, %s722_s23 }
  0x47   : > { %p726_p0 = pneg %p725_p11  ;;  %p732_p1 = por %p731_p9, %p730_p5 }
  0x49   : > { %p733_p2 = pnand %p732_p1, %p726_p0 }
  0x4b   : > { %736 = shalt.err (!%p733_p2)
}
  0x4c   : > { %s829_s18 = smov 64   ;;  %s830_s8 = smov 4  }
  0x4d   : > { %588 = dma.hbm_to_vmem [thread:$0]  (!%p967_p13), %s961_s4, 256, %s963_s5, %s971_s7, %s829_s18, %s829_s18, %s830_s8  }
  0x4e   : > { %p1091_p3 = scmp.ne.s32.totalorder %s1085_s21, 0 }
  0x4f   : > { %s1002_s15 = sand.u32 (!%p1091_p3), 1, %s807_s10   ;;  %p1092_p7 = scmp.ne.s32.totalorder (!%p1091_p3), %s1083_s19, 0 }
  0x50   : > { %168 = sbr.rel (%p1091_p3) target bundleno = 357 (0x165), region = 28  ;;  %s519_s16 = sshll.u32 (!%p1091_p3), %s1002_s15, 4 }
  0x51   : > { %s171_s22 = scalar_lea.sflag (!%p1091_p3), [#allocation3], %s1002_s15  ;;  %s1006_s24 = scalar_lea.vmem (!%p1091_p3), [#allocation2], %s519_s16 }
  0x57   : > { %790 = dma.done.wait (%p1092_p7), %s171_s22, 256  }
  0x58   : > { %792 = vsyncadd (%p1092_p7), %s171_s22, 4294967040  ;;  %p1093_p13 = scmp.ne.s32.totalorder %s1081_s17, 0 }
  0x5a   : > { %794 = dma.done.wait (%p1093_p13), [#allocation6], 2048  }
  0x5b   : > { %796 = vsyncadd (%p1093_p13), [#allocation6], 4294965248  ;;  %v831_v0 = vmov 0   ;;  %v653_v1 = vld [vmem:[#allocation5 + $0x4] ss:$8 sps:$4 sm:$0xff]   ;;  %s521_s17 = sshll.u32 %s1002_s15, 5 }
  0x5c   : > { %348 = vmatprep.mubr.bf16.mxu0 %v831_v0  ;;  %358 = vmatprep.mubr.bf16.mxu1 %v831_v0  ;;  %v655_v2 = vld [vmem:[#allocation5] ss:$8 sps:$4 sm:$0xff]   ;;  %v656_v3 = vld [vmem:[#allocation5 + $0x14] ss:$8 sps:$4 sm:$0xff]   ;;  %v658_v4 = vld [vmem:[#allocation5 + $0x10] ss:$8 sps:$4 sm:$0xff]  }
  0x5d   : > { %316 = vmatprep.subr.bf16.mxu0 %v653_v1  ;;  %557 = vmatprep.subr.bf16.mxu1 %v653_v1  ;;  %v659_v5 = vld [vmem:[#allocation5 + $0x24] ss:$8 sps:$4 sm:$0xff]   ;;  %v661_v6 = vld [vmem:[#allocation5 + $0x20] ss:$8 sps:$4 sm:$0xff]   ;;  %v662_v7 = vld [vmem:[#allocation5 + $0x34] ss:$8 sps:$4 sm:$0xff]  }
  0x5e   : > { %317 = vmatpush1.bf16.msra.mxu0 %v655_v2  ;;  %565 = vmatpush1.bf16.msra.mxu1 %v655_v2  ;;  %v664_v8 = vld [vmem:[#allocation5 + $0x30] ss:$8 sps:$4 sm:$0xff]   ;;  %v665_v9 = vld [vmem:[#allocation5 + $0x44] ss:$8 sps:$4 sm:$0xff]   ;;  %v667_v10 = vld [vmem:[#allocation5 + $0x40] ss:$8 sps:$4 sm:$0xff]  }
  0x5f   : > { %318 = vmatprep.subr.bf16.mxu0 %v656_v3  ;;  %558 = vmatprep.subr.bf16.mxu1 %v656_v3  ;;  %v668_v11 = vld [vmem:[#allocation5 + $0x54] ss:$8 sps:$4 sm:$0xff]   ;;  %v670_v12 = vld [vmem:[#allocation5 + $0x50] ss:$8 sps:$4 sm:$0xff]   ;;  %v671_v13 = vld [vmem:[#allocation5 + $0x64] ss:$8 sps:$4 sm:$0xff]  }
  0x60   : > { %v673_v14 = vld [vmem:[#allocation5 + $0x60] ss:$8 sps:$4 sm:$0xff]   ;;  %v674_v15 = vld [vmem:[#allocation5 + $0x74] ss:$8 sps:$4 sm:$0xff]   ;;  %v676_v16 = vld [vmem:[#allocation5 + $0x70] ss:$8 sps:$4 sm:$0xff]  }
  0x61   : > { %v677_v17 = vld [vmem:[%s1006_s24] sm:$0xff]   ;;  %v678_v18 = vld [vmem:[%s1006_s24 + $0x8] sm:$0xff]   ;;  %s198_s19 = scalar_lea.vmem [#allocation7], %s521_s17  ;;  %s556_s4 = sshll.u32 %s815_s12, 9 }
  0x62   : > { %319 = vmatpush1.bf16.msra.mxu0 %v658_v4  ;;  %566 = vmatpush1.bf16.msra.mxu1 %v658_v4  ;;  %s414_s21 = sshll.u32 %s198_s19, 4  ;;  %s1025_s7 = scalar_lea.hbm %s1076_s2, %s556_s4  ;;  %s1020_s21 = int_to_ptr.vmem [resolvable:$true] %s414_s21 }
  0x63   : > { %320 = vmatprep.subr.bf16.mxu0 %v659_v5  ;;  %559 = vmatprep.subr.bf16.mxu1 %v659_v5  ;;  %s398_s12 = scalar_lea.sflag [#allocation4], %s1002_s15  ;;  %s737_s27 = scalar_lea.vmem %s1020_s21, 512 }
  0x64   : > { %p738_p4 = scmp.ne.s32.totalorder %s1020_s21, %s737_s27  ;;  %s832_s23 = smov [#allocation7]  }
  0x65   : > { %s741_s29 = sshll.u32 %s832_s23, 4  ;;  %s742_s29 = int_to_ptr.vmem [resolvable:$false] %s741_s29 }
  0x66   : > { %321 = vmatpush1.bf16.msra.mxu0 %v661_v6  ;;  %567 = vmatpush1.bf16.msra.mxu1 %v661_v6  ;;  %p739_p6 = pnand %p738_p4, %p946_p10  ;;  %s743_s30 = scalar_lea.vmem %s742_s29, 1024 }
  0x67   : > { %322 = vmatprep.subr.bf16.mxu0 %v662_v7  ;;  %560 = vmatprep.subr.bf16.mxu1 %v662_v7  ;;  %p744_p12 = scmp.lt.s32.totalorder %s1020_s21, %s742_s29  ;;  %p745_p11 = scmp.lt.s32.totalorder %s743_s30, %s737_s27 }
  0x68   : > { %p740_p8 = pneg %p739_p6 }
  0x69   : > { %p746_p0 = por %p745_p11, %p744_p12 }
  0x6a   : > { %323 = vmatpush1.bf16.msra.mxu0 %v664_v8  ;;  %568 = vmatpush1.bf16.msra.mxu1 %v664_v8 }
  0x6b   : > { %324 = vmatprep.subr.bf16.mxu0 %v665_v9  ;;  %561 = vmatprep.subr.bf16.mxu1 %v665_v9  ;;  %p747_p5 = pnand %p746_p0, %p740_p8 }
  0x6e   : > { %325 = vmatpush1.bf16.msra.mxu0 %v667_v10  ;;  %569 = vmatpush1.bf16.msra.mxu1 %v667_v10 }
  0x6f   : > { %326 = vmatprep.subr.bf16.mxu0 %v668_v11  ;;  %562 = vmatprep.subr.bf16.mxu1 %v668_v11 }
  0x72   : > { %327 = vmatpush1.bf16.msra.mxu0 %v670_v12  ;;  %570 = vmatpush1.bf16.msra.mxu1 %v670_v12 }
  0x73   : > { %328 = vmatprep.subr.bf16.mxu0 %v671_v13  ;;  %563 = vmatprep.subr.bf16.mxu1 %v671_v13 }
  0x76   : > { %329 = vmatpush1.bf16.msra.mxu0 %v673_v14  ;;  %571 = vmatpush1.bf16.msra.mxu1 %v673_v14 }
  0x77   : > { %330 = vmatprep.subr.bf16.mxu0 %v674_v15  ;;  %564 = vmatprep.subr.bf16.mxu1 %v674_v15 }
  0x7a   : > { %331 = vmatpush1.bf16.msra.mxu0 %v676_v16  ;;  %572 = vmatpush1.bf16.msra.mxu1 %v676_v16 }
  0x7d   : > { %349 = vmatmul.mubr.bf16.vlgmr.msra.gmra.mrb[0].mxu0 %v677_v17  ;;  %359 = vmatmul.mubr.bf16.vlgmr.msra.gmra.mrb[0].mxu1 %v678_v18 }
 0x150   : > { %v350_v19 = vpop.f32.mrb[0].mxu0  ;;  %v360_v20 = vpop.f32.mrb[0].mxu1 }
 0x151   : > { %v352_v21 = vpop.f32.mrb[1].mxu0  ;;  %v362_v22 = vpop.f32.mrb[1].mxu1 }
 0x152   : > { %v551_v23 = vpack.c.bf16 %v352_v21, %v350_v19  ;;  %v553_v24 = vpack.c.bf16 %v362_v22, %v360_v20  ;;  %v354_v25 = vpop.f32.mrb[2].mxu0  ;;  %v364_v26 = vpop.f32.mrb[2].mxu1 }
 0x153   : > { %v356_v27 = vpop.f32.mrb[3].mxu0  ;;  %v366_v28 = vpop.f32.mrb[3].mxu1 }
 0x154   : > { %393 = vst [vmem:[%s198_s19] sm:$0xff] %v551_v23  ;;  %395 = vst [vmem:[%s198_s19 + $0x10] sm:$0xff] %v553_v24  ;;  %v552_v29 = vpack.c.bf16 %v356_v27, %v354_v25  ;;  %v554_v30 = vpack.c.bf16 %v366_v28, %v364_v26 }
 0x156   : > { %394 = vst [vmem:[%s198_s19 + $0x8] sm:$0xff] %v552_v29  ;;  %396 = vst [vmem:[%s198_s19 + $0x18] sm:$0xff] %v554_v30 }
 0x157   : > { %750 = shalt.err (!%p747_p5)
}
 0x158   : > { %s751_s3 = scalar_lea.hbm %s1025_s7, 512  ;;  %s755_s16 = scalar_lea.hbm %s1076_s2, 1024 }
 0x159   : > { %p752_p9 = scmp.ne.s32.totalorder %s1025_s7, %s751_s3  ;;  %p756_p3 = scmp.lt.u32.totalorder %s1025_s7, %s1076_s2 }
 0x15a   : > { %p757_p7 = scmp.lt.u32.totalorder %s755_s16, %s751_s3  ;;  %p759_p4 = scmp.lt.u32.totalorder %s751_s3, %s1025_s7 }
 0x15b   : > { %p753_p1 = pnand %p752_p9, %p946_p10 }
 0x15c   : > { %p758_p13 = por %p757_p7, %p756_p3 }
 0x15d   : > { %p754_p2 = pneg %p753_p1 }
 0x15e   : > { %p760_p6 = por %p759_p4, %p758_p13 }
 0x160   : > { %p761_p8 = pnand %p760_p6, %p754_p2 }
 0x162   : > { %764 = shalt.err (!%p761_p8)
}
 0x163   : > { %s833_s17 = smov 128   ;;  %s834_s19 = smov 8  }
 0x164   : > { %579 = dma.vmem_to_hbm [thread:$0]  (%p946_p10), %s1020_s21, 512, %s1025_s7, %s398_s12, %s833_s17, %s833_s17, %s834_s19  }
 0x165 PF: > { %s429_s4 = sand.u32 1, %s803_s9   ;;  %p1094_p12 = scmp.ne.s32.totalorder %s1084_s20, 0 }
 0x166   : > { %p1095_p11 = scmp.ge.s32.totalorder %s823_s14, 2  ;;  %s430_s5 = scalar_lea.sflag [#allocation4], %s429_s4 }
 0x168   : > { %p590_p0 = pnand %p1095_p11, %p1094_p12 }
 0x16a   : > { %798 = dma.done.wait (!%p590_p0), %s430_s5, 512  }
 0x16b   : > { %800 = vsyncadd (!%p590_p0), %s430_s5, 4294966784  ;;  %s19_s14 = sadd.s32 1, %s823_s14   ;;  %s1096_s9 = smov %s807_s10 }
 0x16c   : > { %p16_p5 = scmp.ge.s32.totalorder %s19_s14, 4   ;;  %s1097_s10 = smov %s811_s11 }
 0x16d   : > { %s1098_s11 = smov %s955_s28  ;;  %s1099_s12 = smov %s819_s13 }
 0x16e   : > { %s1100_s13 = smov %s1102_s25  ;;  %18 = sbr.rel (!%p16_p5) target bundleno = 7 (0x7), region = 78 }
 0x175   :  { %435 = vsyncpa [#allocation3], 1 }
 0x176   :  { %437 = vsyncpa [#allocation3 + $0x1], 1 }
 0x177   :  { %438 = vsyncpa [#allocation6], 1 }
 0x178   :  { %439 = vsyncpa [#allocation4], 1 }
 0x179   :  { %441 = vsyncpa [#allocation4 + $0x1], 1 }

</bundles_post_ra>
